<compile_context>
chip_gen: v7x
topology: tpu7x:2x2x1
jax: 0.10.0
libtpu: 0.0.40
codegen_flags: <defaults>
</compile_context>

<pallas_src>
import functools
import math

import jax
import jax.numpy as jnp
from jax.experimental import pallas as pl
from jax.experimental.pallas import tpu as pltpu

GAMMA = 1.0   # margin hyperparameter (module default gamma=1); d_norm = 2 (L2)


def _round_up(x, m):
    return ((x + m - 1) // m) * m


def _pick_block_rows(batch):
    # Largest tile from the sweep that still leaves >= 2 grid blocks, so the
    # "parallel" batch axis puts work on both v7x TensorCores (harmless on single-TC
    # v5e/v6e). Larger tiles amortize the ~0.35 us per-grid-step pipeline overhead.
    for tb in (2048, 1024, 512):
        if batch >= 2 * tb:
            return tb
    # Small batches: split into (up to) two blocks on the 8-row sublane boundary.
    return max(8, _round_up(-(-batch // 2), 8))


def _loss_kernel(ent_ref, typ_ref, rel_ref, pf_ref, out_ref, *, tb, batch, gamma):
    # ent_ref / typ_ref: (4, TB, dim) rows for [pos_head, pos_tail, neg_head, neg_tail]
    # rel_ref:           (2, TB, dim) rows for [pos_relation, neg_relation]
    # pf_ref:            (TB, dim)    paths factor for the positive triples
    f32 = jnp.float32

    # pos_dis = ent(h+)*typ(h+) + rel(r+) + paths_factor - ent(t+)*typ(t+)
    pos_dis = (ent_ref[0].astype(f32) * typ_ref[0].astype(f32)
               + rel_ref[0].astype(f32) + pf_ref[...].astype(f32)
               - ent_ref[1].astype(f32) * typ_ref[1].astype(f32))
    pos_norm = jnp.sqrt(jnp.sum(pos_dis * pos_dis, axis=-1, keepdims=True))   # (TB, 1)

    # neg_dis = ent(h-)*typ(h-) + rel(r-) - ent(t-)*typ(t-)
    neg_dis = (ent_ref[2].astype(f32) * typ_ref[2].astype(f32)
               + rel_ref[1].astype(f32)
               - ent_ref[3].astype(f32) * typ_ref[3].astype(f32))
    neg_norm = jnp.sqrt(jnp.sum(neg_dis * neg_dis, axis=-1, keepdims=True))   # (TB, 1)

    contrib = (jnp.maximum(gamma + pos_norm - neg_norm, 0.0)
               + 0.001 * (pos_norm + neg_norm))                               # (TB, 1)

    def _store(vals):
        partial = jnp.sum(vals, axis=0, keepdims=True)                        # (1, 1)
        # Full (8, 128) tile filled with the block's partial sum -> unmasked vst.
        out_ref[...] = jnp.broadcast_to(partial, out_ref.shape).astype(out_ref.dtype)

    rem = batch % tb
    if rem == 0:
        _store(contrib)          # every block is full: zero masking work
    else:
        last = pl.num_programs(0) - 1

        @pl.when(pl.program_id(0) != last)
        def _():
            _store(contrib)

        @pl.when(pl.program_id(0) == last)
        def _():
            # Select (not multiply-by-mask): NaN-safe even if the undefined tail of
            # the partial block holds garbage.
            row = jax.lax.broadcasted_iota(jnp.int32, contrib.shape, 0)
            _store(jnp.where(row < rem, contrib, 0.0))


def ptranse_c_loss(entity_emb, relation_emb, type_emb, paths_factor,
                   pos_head, pos_relation, pos_tail,
                   neg_head, neg_relation, neg_tail,
                   *, gamma=GAMMA, stream_dtype=jnp.bfloat16, block_rows=None):
    """entity_emb/type_emb: [E, dim]; relation_emb: [R, dim]; paths_factor: [B, dim];
    index args: [B] int32. Returns scalar f32 loss (same semantics as PtransE_c.forward).
    stream_dtype controls the dtype of the streamed per-row slabs; math stays f32."""
    B = pos_head.shape[0]
    dim = entity_emb.shape[-1]
    i32 = jnp.int32

    # One gather per table with concatenated indices, straight into the stacked
    # stream layout (XLA fuses gather + convert; no padding, no per-stream slabs).
    ent_idx = jnp.concatenate([pos_head, pos_tail, neg_head, neg_tail]).astype(i32)  # [4B]
    rel_idx = jnp.concatenate([pos_relation, neg_relation]).astype(i32)              # [2B]

    ent_rows = entity_emb[ent_idx].astype(stream_dtype).reshape(4, B, dim)
    typ_rows = type_emb[ent_idx].astype(stream_dtype).reshape(4, B, dim)
    rel_rows = relation_emb[rel_idx].astype(stream_dtype).reshape(2, B, dim)
    pf_rows = paths_factor.astype(stream_dtype)                                      # [B, dim]

    TB = block_rows if block_rows is not None else _pick_block_rows(B)
    TB = max(8, _round_up(min(TB, _round_up(B, 8)), 8))
    G = pl.cdiv(B, TB)

    # Explicit VMEM budget: 11 double-buffered row streams per block plus headroom.
    # (v5e default scoped VMEM = 16 MiB; well under the 64 MiB physical VMEM on v7x.)
    itemsize = jnp.dtype(stream_dtype).itemsize
    per_block_in = 11 * TB * dim * itemsize
    vmem_limit = int(min(100 * 2**20, 2 * per_block_in + 16 * 2**20))

    kernel = functools.partial(_loss_kernel, tb=TB, batch=B, gamma=float(gamma))

    partials = pl.pallas_call(
        kernel,
        out_shape=jax.ShapeDtypeStruct((G * 8, 128), jnp.float32),
        grid=(G,),
        in_specs=[
            pl.BlockSpec((4, TB, dim), lambda i: (0, i, 0)),   # entity rows
            pl.BlockSpec((4, TB, dim), lambda i: (0, i, 0)),   # type rows
            pl.BlockSpec((2, TB, dim), lambda i: (0, i, 0)),   # relation rows
            pl.BlockSpec((TB, dim), lambda i: (i, 0)),         # paths_factor
        ],
        out_specs=pl.BlockSpec((8, 128), lambda i: (i, 0)),
        compiler_params=pltpu.CompilerParams(
            dimension_semantics=("parallel",),
            vmem_limit_bytes=vmem_limit),
    )(ent_rows, typ_rows, rel_rows, pf_rows)

    # One (8, 128) tile per block, each filled with that block's partial sum.
    return jnp.sum(partials.reshape(G, 8, 128)[:, 0, 0])


def reference_loss(entity_emb, relation_emb, type_emb, paths_factor,
                   ph, pr, pt, nh, nr, nt, gamma=GAMMA, stream_dtype=jnp.float32):
    """Plain-JAX mirror of PtransE_c.forward for validation. stream_dtype rounds the
    gathered rows the same way the kernel's streamed slabs are rounded."""
    r = lambda x: x.astype(stream_dtype).astype(jnp.float32)
    rich = lambda idx: r(entity_emb[idx]) * r(type_emb[idx])
    pos_dis = rich(ph) + r(relation_emb[pr]) + r(paths_factor) - rich(pt)
    neg_dis = rich(nh) + r(relation_emb[nr]) - rich(nt)
    pos_norm = jnp.linalg.norm(pos_dis, axis=1)
    neg_norm = jnp.linalg.norm(neg_dis, axis=1)
    return (jnp.sum(jnp.maximum(gamma + pos_norm - neg_norm, 0.0))
            + 0.001 * (jnp.sum(pos_norm) + jnp.sum(neg_norm)))


if __name__ == "__main__":
    B = 12          # batch size (non-multiple of 8 -> exercises tail masking, 2 blocks)
    E = 32          # entity_num
    R = 16          # relation_num
    DIM = 50        # embedding dim (module default)

    key = jax.random.PRNGKey(0)
    k_ent, k_rel, k_typ, k_idx, k_path, k_prob = jax.random.split(key, 6)

    bound = 6.0 / math.sqrt(DIM)
    entity_emb = jax.random.uniform(k_ent, (E, DIM), jnp.float32, -bound, bound)
    relation_emb = jax.random.uniform(k_rel, (R, DIM), jnp.float32, -bound, bound)
    relation_emb = relation_emb / jnp.linalg.norm(relation_emb, axis=1, keepdims=True)
    # synthetic stand-in for train_dataset.load_rich_embedding()[1]
    type_emb = jax.random.uniform(k_typ, (E, DIM), jnp.float32, 0.5, 1.5)

    idx = jax.random.randint(k_idx, (6, B), 0, E).astype(jnp.int32)
    pos_head, pos_tail, neg_head, neg_tail = idx[0], idx[1], idx[2], idx[3]
    pos_relation = (idx[4] % R).astype(jnp.int32)
    neg_relation = (idx[5] % R).astype(jnp.int32)

    # TODO(synk): the per-(head,tail) Python dict walk over self.paths_dict is
    # host-side glue; it is represented here as dense per-batch path relation
    # indices + probabilities, precomputed into paths_factor [B, DIM].
    n_paths, path_len = 2, 2
    path_rels = jax.random.randint(k_path, (B, n_paths, path_len), 0, R)
    path_probs = jax.random.uniform(k_prob, (B, n_paths), jnp.float32)
    paths_emb = relation_emb[path_rels].sum(axis=2)                 # [B, n_paths, DIM]
    paths_factor = (paths_emb * path_probs[..., None]).sum(axis=1)  # [B, DIM]

    args = (entity_emb, relation_emb, type_emb, paths_factor,
            pos_head, pos_relation, pos_tail,
            neg_head, neg_relation, neg_tail)

    # f32 streams: near-exact match with the f32 reference.
    loss_f32 = jax.block_until_ready(ptranse_c_loss(*args, stream_dtype=jnp.float32))
    ref_f32 = reference_loss(*args)
    assert jnp.allclose(loss_f32, ref_f32, rtol=1e-5, atol=1e-5), (loss_f32, ref_f32)

    # bf16 streams (default fast path): inputs rounded to bf16, math in f32; compare
    # against a reference that rounds its gathered rows identically.
    loss_bf16 = jax.block_until_ready(ptranse_c_loss(*args))
    ref_bf16 = reference_loss(*args, stream_dtype=jnp.bfloat16)
    assert jnp.allclose(loss_bf16, ref_bf16, rtol=1e-4, atol=1e-4), (loss_bf16, ref_bf16)
    assert jnp.allclose(loss_bf16, ref_f32, rtol=5e-2, atol=5e-2), (loss_bf16, ref_f32)

    print("KERNEL_OK")
</pallas_src>

<mosaic_0001>
module attributes {stable_mosaic.version = 11 : i64} {
  func.func @_loss_kernel(%arg0: i32, %arg1: memref<4x8x50xf32, #tpu.memory_space<vmem>>, %arg2: memref<4x8x50xf32, #tpu.memory_space<vmem>>, %arg3: memref<2x8x50xf32, #tpu.memory_space<vmem>>, %arg4: memref<8x50xf32, #tpu.memory_space<vmem>>, %arg5: memref<8x128xf32, #tpu.memory_space<vmem>>) attributes {dimension_semantics = [#tpu.dimension_semantics<parallel>], iteration_bounds = array<i64: 2>, scalar_prefetch = 0 : i64, scratch_operands = 0 : i64, tpu.core_type = #tpu.core_type<tc>, window_params = [{transform_indices = @transform_0, window_bounds = array<i64: 4, 8, 50>}, {transform_indices = @transform_1, window_bounds = array<i64: 4, 8, 50>}, {transform_indices = @transform_2, window_bounds = array<i64: 2, 8, 50>}, {transform_indices = @transform_3, window_bounds = array<i64: 8, 50>}, {transform_indices = @transform_4, window_bounds = array<i64: 8, 128>}]} {
    %c0 = arith.constant 0 : index
    %c0_0 = arith.constant 0 : index
    %c0_1 = arith.constant 0 : index
    %0 = vector.load %arg1[%c0, %c0_0, %c0_1] : memref<4x8x50xf32, #tpu.memory_space<vmem>>, vector<1x8x50xf32>
    %1 = vector.shape_cast %0 : vector<1x8x50xf32> to vector<8x50xf32>
    %c0_2 = arith.constant 0 : index
    %c0_3 = arith.constant 0 : index
    %c0_4 = arith.constant 0 : index
    %2 = vector.load %arg2[%c0_2, %c0_3, %c0_4] : memref<4x8x50xf32, #tpu.memory_space<vmem>>, vector<1x8x50xf32>
    %3 = vector.shape_cast %2 : vector<1x8x50xf32> to vector<8x50xf32>
    %4 = arith.mulf %1, %3 : vector<8x50xf32>
    %c0_5 = arith.constant 0 : index
    %c0_6 = arith.constant 0 : index
    %c0_7 = arith.constant 0 : index
    %5 = vector.load %arg3[%c0_5, %c0_6, %c0_7] : memref<2x8x50xf32, #tpu.memory_space<vmem>>, vector<1x8x50xf32>
    %6 = vector.shape_cast %5 : vector<1x8x50xf32> to vector<8x50xf32>
    %7 = arith.addf %4, %6 : vector<8x50xf32>
    %c0_8 = arith.constant 0 : index
    %c0_9 = arith.constant 0 : index
    %8 = vector.load %arg4[%c0_8, %c0_9] : memref<8x50xf32, #tpu.memory_space<vmem>>, vector<8x50xf32>
    %9 = arith.addf %7, %8 : vector<8x50xf32>
    %c1 = arith.constant 1 : index
    %c0_10 = arith.constant 0 : index
    %c0_11 = arith.constant 0 : index
    %10 = vector.load %arg1[%c1, %c0_10, %c0_11] : memref<4x8x50xf32, #tpu.memory_space<vmem>>, vector<1x8x50xf32>
    %11 = vector.shape_cast %10 : vector<1x8x50xf32> to vector<8x50xf32>
    %c1_12 = arith.constant 1 : index
    %c0_13 = arith.constant 0 : index
    %c0_14 = arith.constant 0 : index
    %12 = vector.load %arg2[%c1_12, %c0_13, %c0_14] : memref<4x8x50xf32, #tpu.memory_space<vmem>>, vector<1x8x50xf32>
    %13 = vector.shape_cast %12 : vector<1x8x50xf32> to vector<8x50xf32>
    %14 = arith.mulf %11, %13 : vector<8x50xf32>
    %15 = arith.subf %9, %14 : vector<8x50xf32>
    %16 = arith.mulf %15, %15 : vector<8x50xf32>
    %cst = arith.constant dense<0.000000e+00> : vector<8xf32>
    %17 = vector.multi_reduction <add>, %16, %cst [1] : vector<8x50xf32> to vector<8xf32>
    %18 = vector.shape_cast %17 : vector<8xf32> to vector<8x1xf32>
    %19 = math.sqrt %18 : vector<8x1xf32>
    %c2 = arith.constant 2 : index
    %c0_15 = arith.constant 0 : index
    %c0_16 = arith.constant 0 : index
    %20 = vector.load %arg1[%c2, %c0_15, %c0_16] : memref<4x8x50xf32, #tpu.memory_space<vmem>>, vector<1x8x50xf32>
    %21 = vector.shape_cast %20 : vector<1x8x50xf32> to vector<8x50xf32>
    %c2_17 = arith.constant 2 : index
    %c0_18 = arith.constant 0 : index
    %c0_19 = arith.constant 0 : index
    %22 = vector.load %arg2[%c2_17, %c0_18, %c0_19] : memref<4x8x50xf32, #tpu.memory_space<vmem>>, vector<1x8x50xf32>
    %23 = vector.shape_cast %22 : vector<1x8x50xf32> to vector<8x50xf32>
    %24 = arith.mulf %21, %23 : vector<8x50xf32>
    %c1_20 = arith.constant 1 : index
    %c0_21 = arith.constant 0 : index
    %c0_22 = arith.constant 0 : index
    %25 = vector.load %arg3[%c1_20, %c0_21, %c0_22] : memref<2x8x50xf32, #tpu.memory_space<vmem>>, vector<1x8x50xf32>
    %26 = vector.shape_cast %25 : vector<1x8x50xf32> to vector<8x50xf32>
    %27 = arith.addf %24, %26 : vector<8x50xf32>
    %c3 = arith.constant 3 : index
    %c0_23 = arith.constant 0 : index
    %c0_24 = arith.constant 0 : index
    %28 = vector.load %arg1[%c3, %c0_23, %c0_24] : memref<4x8x50xf32, #tpu.memory_space<vmem>>, vector<1x8x50xf32>
    %29 = vector.shape_cast %28 : vector<1x8x50xf32> to vector<8x50xf32>
    %c3_25 = arith.constant 3 : index
    %c0_26 = arith.constant 0 : index
    %c0_27 = arith.constant 0 : index
    %30 = vector.load %arg2[%c3_25, %c0_26, %c0_27] : memref<4x8x50xf32, #tpu.memory_space<vmem>>, vector<1x8x50xf32>
    %31 = vector.shape_cast %30 : vector<1x8x50xf32> to vector<8x50xf32>
    %32 = arith.mulf %29, %31 : vector<8x50xf32>
    %33 = arith.subf %27, %32 : vector<8x50xf32>
    %34 = arith.mulf %33, %33 : vector<8x50xf32>
    %cst_28 = arith.constant dense<0.000000e+00> : vector<8xf32>
    %35 = vector.multi_reduction <add>, %34, %cst_28 [1] : vector<8x50xf32> to vector<8xf32>
    %36 = vector.shape_cast %35 : vector<8xf32> to vector<8x1xf32>
    %37 = math.sqrt %36 : vector<8x1xf32>
    %cst_29 = arith.constant 1.000000e+00 : f32
    %38 = vector.broadcast %cst_29 : f32 to vector<8x1xf32>
    %39 = arith.addf %38, %19 : vector<8x1xf32>
    %40 = arith.subf %39, %37 : vector<8x1xf32>
    %cst_30 = arith.constant 0.000000e+00 : f32
    %41 = vector.broadcast %cst_30 : f32 to vector<8x1xf32>
    %42 = arith.maximumf %40, %41 : vector<8x1xf32>
    %43 = arith.addf %19, %37 : vector<8x1xf32>
    %cst_31 = arith.constant 1.000000e-03 : f32
    %44 = vector.broadcast %cst_31 : f32 to vector<8x1xf32>
    %45 = arith.mulf %44, %43 : vector<8x1xf32>
    %46 = arith.addf %42, %45 : vector<8x1xf32>
    %c1_i32 = arith.constant 1 : i32
    %47 = arith.cmpi ne, %arg0, %c1_i32 : i32
    %48 = arith.extui %47 : i1 to i32
    %c0_i32 = arith.constant 0 : i32
    %49 = arith.cmpi ne, %48, %c0_i32 : i32
    scf.if %49 {
      %cst_34 = arith.constant dense<0.000000e+00> : vector<1xf32>
      %53 = vector.multi_reduction <add>, %46, %cst_34 [0] : vector<8x1xf32> to vector<1xf32>
      %54 = vector.shape_cast %53 : vector<1xf32> to vector<1x1xf32>
      %55 = vector.shape_cast %54 : vector<1x1xf32> to vector<1x1xf32>
      %56 = vector.broadcast %55 : vector<1x1xf32> to vector<8x128xf32>
      %c0_35 = arith.constant 0 : index
      %c0_36 = arith.constant 0 : index
      %57 = vector.load %arg5[%c0_35, %c0_36] : memref<8x128xf32, #tpu.memory_space<vmem>>, vector<8x128xf32>
      tpu.vector_store %arg5[%c0_35, %c0_36], %56 {strides = array<i32>} : memref<8x128xf32, #tpu.memory_space<vmem>>, vector<8x128xf32>,
    } else {
    }
    %c1_i32_32 = arith.constant 1 : i32
    %50 = arith.cmpi eq, %arg0, %c1_i32_32 : i32
    %51 = arith.extui %50 : i1 to i32
    %c0_i32_33 = arith.constant 0 : i32
    %52 = arith.cmpi ne, %51, %c0_i32_33 : i32
    scf.if %52 {
      %53 = tpu.iota {dimensions = array<i32: 0>} : vector<8x1xi32>
      %c4_i32 = arith.constant 4 : i32
      %54 = vector.broadcast %c4_i32 : i32 to vector<8x1xi32>
      %55 = arith.cmpi slt, %53, %54 : vector<8x1xi32>
      %cst_34 = arith.constant 0.000000e+00 : f32
      %56 = vector.broadcast %cst_34 : f32 to vector<8x1xf32>
      %57 = arith.select %55, %46, %56 : vector<8x1xi1>, vector<8x1xf32>
      %cst_35 = arith.constant dense<0.000000e+00> : vector<1xf32>
      %58 = vector.multi_reduction <add>, %57, %cst_35 [0] : vector<8x1xf32> to vector<1xf32>
      %59 = vector.shape_cast %58 : vector<1xf32> to vector<1x1xf32>
      %60 = vector.shape_cast %59 : vector<1x1xf32> to vector<1x1xf32>
      %61 = vector.broadcast %60 : vector<1x1xf32> to vector<8x128xf32>
      %c0_36 = arith.constant 0 : index
      %c0_37 = arith.constant 0 : index
      %62 = vector.load %arg5[%c0_36, %c0_37] : memref<8x128xf32, #tpu.memory_space<vmem>>, vector<8x128xf32>
      tpu.vector_store %arg5[%c0_36, %c0_37], %61 {strides = array<i32>} : memref<8x128xf32, #tpu.memory_space<vmem>>, vector<8x128xf32>,
    } else {
    }
    return
  }
  func.func @transform_0(%arg0: i32) -> (i32, i32, i32) {
    %c0_i32 = arith.constant 0 : i32
    %c0_i32_0 = arith.constant 0 : i32
    %c0_i32_1 = arith.constant 0 : i32
    return %c0_i32, %arg0, %c0_i32_0 : i32, i32, i32
  }
  func.func @transform_1(%arg0: i32) -> (i32, i32, i32) {
    %c0_i32 = arith.constant 0 : i32
    %c0_i32_0 = arith.constant 0 : i32
    %c0_i32_1 = arith.constant 0 : i32
    return %c0_i32, %arg0, %c0_i32_0 : i32, i32, i32
  }
  func.func @transform_2(%arg0: i32) -> (i32, i32, i32) {
    %c0_i32 = arith.constant 0 : i32
    %c0_i32_0 = arith.constant 0 : i32
    %c0_i32_1 = arith.constant 0 : i32
    return %c0_i32, %arg0, %c0_i32_0 : i32, i32, i32
  }
  func.func @transform_3(%arg0: i32) -> (i32, i32) {
    %c0_i32 = arith.constant 0 : i32
    %c0_i32_0 = arith.constant 0 : i32
    return %arg0, %c0_i32 : i32, i32
  }
  func.func @transform_4(%arg0: i32) -> (i32, i32) {
    %c0_i32 = arith.constant 0 : i32
    %c0_i32_0 = arith.constant 0 : i32
    return %arg0, %c0_i32 : i32, i32
  }
}

</mosaic_0001>

<bundles_post_ra>
// kernel: tpu_custom_call.1
= control target key start
LH: loop header
LB: loop body
LE: loop exit
PB: predicated region body
PF: predicated region fallthrough
CT: control target
= control target key end

     0   :  { %9 = vsyncpa [#allocation6], 0  ;;  %s892_s0 = inlined_call_operand.vmem [shape: f32[4,12,50], index: 0, kind: input, shape index: {}]   ;;  %s893_s1 = inlined_call_operand.vmem [shape: f32[4,12,50], index: 1, kind: input, shape index: {}]   ;;  %s894_s2 = inlined_call_operand.vmem [shape: f32[2,12,50], index: 2, kind: input, shape index: {}]   ;;  %s895_s3 = inlined_call_operand.vmem [shape: f32[12,50], index: 3, kind: input, shape index: {}]   ;;  %s896_s4 = inlined_call_operand.hbm [shape: f32[16,128], index: 4, kind: output, shape index: {}]  }
   0x1   :  { %11 = vsyncpa [#allocation6 + $0x1], 0  ;;  %s753_s15 = smov 0   ;;  %s755_s16 = smov 0  }
   0x2   :  { %s757_s17 = smov 0   ;;  %s759_s18 = smov 0  }
   0x3 LB: > { %s774_s19 = sadd.s32 4294967295, %s725_s18   ;;  %s592_s20 = sadd.s32 4294967294, %s725_s18   ;;  %s725_s18 = sphi %s759_s18, %s903_s18   ;;  %s721_s17 = sphi %s757_s17, %s902_s17   ;;  %s717_s16 = sphi %s755_s16, %s901_s16   ;;  %s713_s15 = sphi %s753_s15, %s900_s15  }
   0x4   : > { %s778_s21 = sadd.s32 1, %s725_s18   ;;  %s24_s22 = sadd.s32 1, %s721_s17 }
   0x5   : > { %s21_s23 = ssub.s32 %s725_s18, %s778_s21  ;;  %p31_p0 = scmp.ne.s32.totalorder %s721_s17, %s717_s16 }
   0x6   : > { %p22_p1 = scmp.eq.s32.totalorder %s21_s23, 0  ;;  %p32_p2 = scmp.eq.s32.totalorder %s725_s18, 0 }
   0x7   : > { %p139_p3 = scmp.eq.s32.totalorder %s774_s19, 1  ;;  %p144_p4 = scmp.ne.s32.totalorder %s717_s16, %s713_s15 }
   0x8   : > { %s790_s24 = scalar_select %p22_p1, %s721_s17, %s24_s22  }
   0x9   : > { %p792_p5 = por %p32_p2, %p31_p0  ;;  %p798_p6 = por %p139_p3, %p31_p0 }
   0xa   : > { %p145_p7 = scmp.eq.s32.totalorder %s592_s20, 1  ;;  %p594_p9 = scmp.ge.s32.totalorder %s725_s18, 2 }
   0xc   : > { %p802_p8 = por %p145_p7, %p144_p4  ;;  %161 = sbr.rel (%p594_p9) target bundleno = 40 (0x28), region = 16 }
  0x13   : > { %164 = sbr.rel (!%p792_p5) target bundleno = 26 (0x1a), region = 20  ;;  %s166_s28 = sand.u32 (%p792_p5), 1, %s721_s17  }
  0x14   : > { %s596_s29 = sshll.u32 (%p792_p5), %s725_s18, 3  ;;  %s595_s30 = sshll.u32 (%p792_p5), %s166_s28, 5 }
  0x15   : > { %s170_s7 = scalar_lea.vmem (%p792_p5), %s892_s0, %s596_s29  ;;  %s168_s8 = scalar_lea.vmem (%p792_p5), [#allocation2], %s595_s30 }
  0x16   : > { %v204_v0 = vld [vmem:[%s170_s7] sm:$0xff] (%p792_p5)  ;;  %v206_v1 = vld [vmem:[%s170_s7 + $0x10] sm:$0xff] (%p792_p5) }
  0x17   : > { %v208_v2 = vld [vmem:[%s170_s7 + $0x20] sm:$0xff] (%p792_p5)  ;;  %205 = vst [vmem:[%s168_s8] sm:$0xff] (%p792_p5), %v204_v0  ;;  %207 = vst [vmem:[%s168_s8 + $0x8] sm:$0xff] (%p792_p5), %v206_v1  ;;  %v210_v3 = vld [vmem:[%s170_s7 + $0x30] sm:$0xff] (%p792_p5) }
  0x18   : > { %209 = vst [vmem:[%s168_s8 + $0x10] sm:$0xff] (%p792_p5), %v208_v2  ;;  %211 = vst [vmem:[%s168_s8 + $0x18] sm:$0xff] (%p792_p5), %v210_v3 }
  0x1a PF: > { %217 = sbr.rel (!%p792_p5) target bundleno = 33 (0x21), region = 58  ;;  %s219_s9 = sand.u32 (%p792_p5), 1, %s721_s17  }
  0x1b   : > { %s598_s10 = sshll.u32 (%p792_p5), %s725_s18, 3  ;;  %s597_s11 = sshll.u32 (%p792_p5), %s219_s9, 5 }
  0x1c   : > { %s223_s14 = scalar_lea.vmem (%p792_p5), %s893_s1, %s598_s10  ;;  %s221_s20 = scalar_lea.vmem (%p792_p5), [#allocation3], %s597_s11 }
  0x1d   : > { %v257_v4 = vld [vmem:[%s223_s14] sm:$0xff] (%p792_p5)  ;;  %v259_v5 = vld [vmem:[%s223_s14 + $0x10] sm:$0xff] (%p792_p5) }
  0x1e   : > { %v261_v6 = vld [vmem:[%s223_s14 + $0x20] sm:$0xff] (%p792_p5)  ;;  %258 = vst [vmem:[%s221_s20] sm:$0xff] (%p792_p5), %v257_v4  ;;  %260 = vst [vmem:[%s221_s20 + $0x8] sm:$0xff] (%p792_p5), %v259_v5  ;;  %v263_v7 = vld [vmem:[%s223_s14 + $0x30] sm:$0xff] (%p792_p5) }
  0x1f   : > { %262 = vst [vmem:[%s221_s20 + $0x10] sm:$0xff] (%p792_p5), %v261_v6  ;;  %264 = vst [vmem:[%s221_s20 + $0x18] sm:$0xff] (%p792_p5), %v263_v7 }
  0x21 PF: > { %270 = sbr.rel (!%p792_p5) target bundleno = 40 (0x28), region = 96  ;;  %s272_s22 = sand.u32 (%p792_p5), 1, %s721_s17  }
  0x22   : > { %s600_s23 = sshll.u32 (%p792_p5), %s725_s18, 3  ;;  %s599_s28 = sshll.u32 (%p792_p5), %s272_s22, 4 }
  0x23   : > { %s276_s5 = scalar_lea.vmem (%p792_p5), %s894_s2, %s600_s23  ;;  %s274_s6 = scalar_lea.vmem (%p792_p5), [#allocation4], %s599_s28 }
  0x24   : > { %v306_v8 = vld [vmem:[%s276_s5] sm:$0xff] (%p792_p5)  ;;  %v308_v9 = vld [vmem:[%s276_s5 + $0x10] sm:$0xff] (%p792_p5) }
  0x25   : > { %307 = vst [vmem:[%s274_s6] sm:$0xff] (%p792_p5), %v306_v8  ;;  %309 = vst [vmem:[%s274_s6 + $0x8] sm:$0xff] (%p792_p5), %v308_v9 }
  0x28 PF: > { %p601_p10 = scmp.ge.s32.totalorder %s725_s18, 1  ;;  %p321_p11 = scmp.lt.s32.totalorder %s725_s18, 3 }
  0x2a   : > { %p322_p12 = pnand %p601_p10, %p321_p11 }
  0x2b   : > { %s833_s25 = sand.u32 (!%p322_p12), 1, %s717_s16   ;;  %p379_p13 = scmp.lt.s32.totalorder (!%p322_p12), %s774_s19, 1  ;;  %vm397_vm0 = vcmask (!%p322_p12), 408576  }
  0x2c   : > { %325 = sbr.rel (%p322_p12) target bundleno = 287 (0x11f), region = 138  ;;  %s602_s7 = sshll.u32 (!%p322_p12), %s833_s25, 5 }
  0x2d   : > { %s604_s8 = sshll.u32 (!%p322_p12), %s833_s25, 4  ;;  %s605_s9 = sshll.u32 (!%p322_p12), %s833_s25, 3 }
  0x2e   : > { %s330_s10 = scalar_lea.vmem (!%p322_p12), [#allocation2], %s602_s7  ;;  %s337_s11 = scalar_lea.vmem (!%p322_p12), [#allocation3], %s602_s7 }
  0x2f   : > { %v383_v10 = vld [vmem:[%s330_s10] sm:$0xff] (!%p322_p12)  ;;  %v607_v12 = vld [vmem:[%s330_s10 + $0x8] sm:$0xff] (!%p322_p12)  ;;  %s344_s12 = scalar_lea.vmem (!%p322_p12), [#allocation4], %s604_s8  ;;  %v609_v16 = vld [vmem:[%s330_s10 + $0x10] sm:$0xff] (!%p322_p12)  ;;  %s378_s28 = scalar_lea.vmem (!%p322_p12), [#allocation5], %s605_s9 }
  0x30   : > { %v384_v11 = vld [vmem:[%s337_s11] sm:$0xff] (!%p322_p12)  ;;  %v608_v15 = vld [vmem:[%s337_s11 + $0x8] sm:$0xff] (!%p322_p12)  ;;  %v610_v17 = vld [vmem:[%s337_s11 + $0x10] sm:$0xff] (!%p322_p12) }
  0x31   : > { %v385_v13 = vmul.f32 (!%p322_p12), %v384_v11, %v383_v10  ;;  %v386_v14 = vld [vmem:[%s344_s12] sm:$0xff] (!%p322_p12)  ;;  %v611_v18 = vld [vmem:[%s344_s12 + $0x8] sm:$0xff] (!%p322_p12)  ;;  %v412_v21 = vmul.f32 (!%p322_p12), %v610_v17, %v609_v16  ;;  %v394_v24 = vmul.f32 (!%p322_p12), %v608_v15, %v607_v12 }
  0x32   : > { %v612_v19 = vld [vmem:[%s330_s10 + $0x18] sm:$0xff] (!%p322_p12) }
  0x33   : > { %s380_s13 = scalar_select %p379_p13, %s774_s19, 1  ;;  %v387_v20 = vadd.f32 %v386_v14, %v385_v13  ;;  %v613_v22 = vld [vmem:[%s337_s11 + $0x18] sm:$0xff]  ;;  %v415_v25 = vadd.f32 %v611_v18, %v412_v21 }
  0x34   : > { %v420_v23 = vmul.f32 %v613_v22, %v612_v19 }
  0x35   : > { %s606_s14 = sshll.u32 %s380_s13, 3 }
  0x36   : > { %s382_s23 = scalar_lea.vmem %s895_s3, %s606_s14  ;;  %v421_v28 = vsub.f32 %v415_v25, %v420_v23 }
  0x37   : > { %v388_v26 = vld [vmem:[%s382_s23] sm:$0xff] }
  0x38   : > { %v389_v27 = vadd.f32 %v388_v26, %v387_v20  ;;  %v422_v31 = vmul.f32 %v421_v28, %v421_v28 }
  0x3a   : > { %v395_v29 = vsub.f32 %v389_v27, %v394_v24  ;;  %v423_v33 = vsel %vm397_vm0, %v422_v31, 0.0 }
  0x3c   : > { %v396_v30 = vmul.f32 %v395_v29, %v395_v29 }
  0x3e   : > { %v398_v32 = vsel %vm397_vm0, %v396_v30, 0.0 }
  0x3f   : > { %399 = vadd.xlane.f32.xlu0 %v398_v32 }
  0x43   : > { %424 = vadd.xlane.f32.xlu0 %v423_v33 }
  0xcc   : > { %v400_v34 = vpop.xlane.xlu0 %399 }
  0xcd   : > { %659 = vrsqrt.f32 %v400_v34  ;;  %vm403_vm1 = vcmp.eq.f32.partialorder %v400_v34, inf  ;;  %v406_v38 = vand.u32 2147483648, %v400_v34  ;;  %vm405_vm2 = vcmp.eq.f32.partialorder %v400_v34, 0.0 }
  0xd0   : > { %v425_v35 = vpop.xlane.xlu0 %424 }
  0xd1   : > { %661 = vrsqrt.f32 %v425_v35  ;;  %vm428_vm3 = vcmp.eq.f32.partialorder %v425_v35, inf  ;;  %v431_v43 = vand.u32 2147483648, %v425_v35  ;;  %vm430_vm4 = vcmp.eq.f32.partialorder %v425_v35, 0.0 }
  0xd7   : > { %v660_v36 = vpop.eup %659 }
  0xd8   : > { %v402_v37 = vmul.f32 %v660_v36, %v400_v34 }
  0xda   : > { %v404_v39 = vsel %vm403_vm1, %v400_v34, %v402_v37 }
  0xdb   : > { %v662_v40 = vpop.eup %661  ;;  %v407_v41 = vsel %vm405_vm2, %v406_v38, %v404_v39 }
  0xdc   : > { %v427_v42 = vmul.f32 %v662_v40, %v425_v35  ;;  %v433_v44 = vadd.f32 1.0, %v407_v41 }
  0xde   : > { %v429_v45 = vsel %vm428_vm3, %v425_v35, %v427_v42  ;;  %442 = sbr.rel (%p139_p3) target bundleno = 243 (0xf3), region = 154 }
  0xdf   : > { %v432_v46 = vsel %vm430_vm4, %v431_v43, %v429_v45 }
  0xe0   : > { %v434_v47 = vsub.f32 %v433_v44, %v432_v46  ;;  %v436_v48 = vadd.f32 %v432_v46, %v407_v41 }
  0xe2   : > { %v435_v49 = vmax.f32 %v434_v47, 0.0  ;;  %v437_v50 = vmul.f32 0.001, %v436_v48 }
  0xe4   : > { %v438_v51 = vadd.f32 %v437_v50, %v435_v49 }
  0xe6   : > { %v443_v52 = vrot.slane %v438_v51, 4 }
  0xe8   : > { %v444_v53 = vadd.f32 %v443_v52, %v438_v51 }
  0xea   : > { %v445_v54 = vrot.slane %v444_v53, 2 }
  0xec   : > { %v446_v55 = vadd.f32 %v445_v54, %v444_v53 }
  0xee   : > { %v447_v56 = vrot.slane %v446_v55, 1 }
  0xf0   : > { %v448_v57 = vadd.f32 %v447_v56, %v446_v55 }
  0xf2   : > { %449 = vst [vmem:[%s378_s28] sm:$0xff] %v448_v57 }
  0xf3 PF: > { %p615_p0 = scmp.ne.s32.totalorder %s774_s19, 1 }
  0xf4   : > { %v454_v58 = vlaneseq (!%p615_p0) }
  0xf5   : > { %453 = sbr.rel (%p615_p0) target bundleno = 263 (0x107), region = 158 }
  0xf6   : > { %v455_v59 = vshrl.u32 (!%p615_p0), %v454_v58, 7 }
  0xf8   : > { %vm456_vm5 = vcmp.lt.s32.totalorder (!%p615_p0), %v455_v59, 4 }
  0xf9   : > { %v457_v60 = vsel (!%p615_p0), %vm456_vm5, %v438_v51, 0.0 }
  0xfa   : > { %v458_v61 = vrot.slane (!%p615_p0), %v457_v60, 4 }
  0xfc   : > { %v459_v62 = vadd.f32 %v458_v61, %v457_v60 }
  0xfe   : > { %v460_v63 = vrot.slane %v459_v62, 2 }
 0x100   : > { %v461_v0 = vadd.f32 %v460_v63, %v459_v62 }
 0x102   : > { %v462_v1 = vrot.slane %v461_v0, 1 }
 0x104   : > { %v463_v2 = vadd.f32 %v462_v1, %v461_v0 }
 0x106   : > { %464 = vst [vmem:[%s378_s28] sm:$0xff] %v463_v2 }
 0x107 PF: > { %s617_s29 = sshll.u32 %s774_s19, 7  ;;  %s479_s7 = sshll.u32 %s378_s28, 4  ;;  %s480_s7 = int_to_ptr.vmem [resolvable:$true] %s479_s7 }
 0x108   : > { %s854_s6 = scalar_lea.hbm %s896_s4, %s617_s29  ;;  %s466_s8 = scalar_lea.sflag [#allocation6], %s833_s25 }
 0x109   : > { %s663_s9 = scalar_lea.vmem %s480_s7, 128  ;;  %s727_s10 = smov [#allocation5]  }
 0x10a   : > { %p664_p1 = scmp.ne.s32.totalorder %s480_s7, %s663_s9  ;;  %s667_s11 = sshll.u32 %s727_s10, 4  ;;  %s668_s11 = int_to_ptr.vmem [resolvable:$false] %s667_s11 }
 0x10b   : > { %s669_s12 = scalar_lea.vmem %s668_s11, 256  ;;  %p670_p4 = scmp.lt.s32.totalorder %s480_s7, %s668_s11 }
 0x10c   : > { %p665_p2 = pnand %p664_p1, %p798_p6  ;;  %p671_p5 = scmp.lt.s32.totalorder %s669_s12, %s663_s9 }
 0x10e   : > { %p666_p3 = pneg %p665_p2  ;;  %p672_p7 = por %p671_p5, %p670_p4 }
 0x110   : > { %p673_p10 = pnand %p672_p7, %p666_p3 }
 0x112   : > { %676 = shalt.err (!%p673_p10)
}
 0x113   : > { %s677_s19 = scalar_lea.hbm %s854_s6, 128  ;;  %s681_s14 = scalar_lea.hbm %s896_s4, 256 }
 0x114   : > { %p678_p11 = scmp.ne.s32.totalorder %s854_s6, %s677_s19  ;;  %p682_p0 = scmp.lt.u32.totalorder %s854_s6, %s896_s4 }
 0x115   : > { %p683_p1 = scmp.lt.u32.totalorder %s681_s14, %s677_s19  ;;  %p685_p3 = scmp.lt.u32.totalorder %s677_s19, %s854_s6 }
 0x116   : > { %p679_p12 = pnand %p678_p11, %p798_p6 }
 0x117   : > { %p684_p2 = por %p683_p1, %p682_p0 }
 0x118   : > { %p680_p13 = pneg %p679_p12 }
 0x119   : > { %p686_p4 = por %p685_p3, %p684_p2 }
 0x11b   : > { %p687_p5 = pnand %p686_p4, %p680_p13 }
 0x11d   : > { %690 = shalt.err (!%p687_p5)
}
 0x11e   : > { %620 = dma.vmem_to_hbm [thread:$0]  (%p798_p6), %s480_s7, 128, %s854_s6, %s466_s8  }
 0x11f PF: > { %s491_s23 = sand.u32 1, %s713_s15   ;;  %p623_p7 = pnand %p594_p9, %p802_p8 }
 0x120   : > { %s492_s28 = scalar_lea.sflag [#allocation6], %s491_s23 }
 0x121   : > { %708 = dma.done.wait (!%p623_p7), %s492_s28, 128  }
 0x122   : > { %710 = vsyncadd (!%p623_p7), %s492_s28, 4294967168  ;;  %p14_p10 = scmp.ge.s32.totalorder %s778_s21, 4   ;;  %s900_s15 = smov %s717_s16 }
 0x123   : > { %s901_s16 = smov %s721_s17  ;;  %s902_s17 = smov %s790_s24 }
 0x124   : > { %s903_s18 = smov %s778_s21  ;;  %16 = sbr.rel (!%p14_p10) target bundleno = 3 (0x3), region = 224 }
 0x12b   :  { %497 = vsyncpa [#allocation6], 1 }
 0x12c   :  { %499 = vsyncpa [#allocation6 + $0x1], 1 }

</bundles_post_ra>
